<compile_context>
chip_gen: v7x
topology: tpu7x:2x2x1
jax: 0.10.0
libtpu: 0.0.40
codegen_flags: <defaults>
</compile_context>

<pallas_src>
import jax
import jax.numpy as jnp
from jax.experimental import pallas as pl
from jax.experimental.pallas import tpu as pltpu

# ----------------------------- config ---------------------------------------
OBSER_DIM = 16
LATENT_DIM = 32
N_LAYERS = 2
BIDIRECTIONAL = True
BATCH = 8
LEAKY_SLOPE = 0.01  # torch.nn.LeakyReLU default negative_slope

_D = 2 if BIDIRECTIONAL else 1
_H = LATENT_DIM
_DH = _D * _H          # 64  : fused hidden width / per-gate block width
_RZ = 2 * _DH          # 128 : width of the [r | z] block of the fused gates
_G = 3 * _DH           # 192 : total fused gate width

# TODO(synk): nn.Dropout / GRU inter-layer dropout act only in training mode;
# this implements the deterministic eval-mode forward (dropout == identity).


def _leaky_relu(x):
    return jnp.where(x > 0, x, LEAKY_SLOPE * x)


# --------------------------- fused Pallas kernel ------------------------------
def fused_forward_kernel(
    x_ref, h_ref,
    e1w_ref, e1b_ref, e2w_ref, e2b_ref, e3w_ref, e3b_ref,
    wih0_ref, whh0_ref, bih0_ref, bhh0_ref,
    wih1_ref, whh1_ref, bih1_ref, bhh1_ref,
    fw_ref, fb_ref,
    pred_ref, hnew_ref,
):
    """Entire f_phi_RNN forward (seq len 1) in one kernel body.

    Fused-gate lane layout (gate-major, direction-minor):
        [ r_fwd | r_bwd | z_fwd | z_bwd | n_fwd | n_bwd ]   (6H = 192 lanes)
    so h_new = (1-z)*n + z*h is produced directly as [fwd | bwd] (2H = 64).
    """
    # ---- embedding_z: Linear -> LeakyReLU -> Linear -> LeakyReLU -> Linear ----
    x = x_ref[...]
    h = _leaky_relu(jnp.dot(x, e1w_ref[...], preferred_element_type=jnp.float32) + e1b_ref[...])
    h = _leaky_relu(jnp.dot(h, e2w_ref[...], preferred_element_type=jnp.float32) + e2b_ref[...])
    emb = jnp.dot(h, e3w_ref[...], preferred_element_type=jnp.float32) + e3b_ref[...]  # (B, H)

    def gru_layer(layer_in, h_cat, wih, whh, bih, bhh):
        # Both directions in one matmul pair (seq len 1: each direction sees
        # the same single time step).
        gi = jnp.dot(layer_in, wih, preferred_element_type=jnp.float32) + bih   # (B, 6H)
        gh = jnp.dot(h_cat, whh, preferred_element_type=jnp.float32) + bhh      # (B, 6H)
        rz = jax.nn.sigmoid(gi[:, :_RZ] + gh[:, :_RZ])                          # (B, 4H)
        r = rz[:, :_DH]
        z = rz[:, _DH:]
        n = jnp.tanh(gi[:, _RZ:] + r * gh[:, _RZ:])                             # (B, 2H)
        return (1.0 - z) * n + z * h_cat                                        # (B, 2H) = [fwd|bwd]

    # layer 0
    h_cat0 = jnp.concatenate([h_ref[0], h_ref[1]], axis=-1)                      # (B, 2H)
    h0_new = gru_layer(emb, h_cat0,
                       wih0_ref[...], whh0_ref[...], bih0_ref[...], bhh0_ref[...])

    # layer 1: input is the concatenated layer-0 direction outputs (already packed)
    h_cat1 = jnp.concatenate([h_ref[2], h_ref[3]], axis=-1)
    h1_new = gru_layer(h0_new, h_cat1,
                       wih1_ref[...], whh1_ref[...], bih1_ref[...], bhh1_ref[...])

    # ---- fc_out on output.squeeze(0) == [h1_fwd | h1_bwd] ----
    pred_ref[...] = jnp.dot(h1_new, fw_ref[...],
                            preferred_element_type=jnp.float32) + fb_ref[...]

    # lane-dense hidden slab: [l0_f | l0_b | l1_f | l1_b] == D*L*H = 128 lanes
    hnew_ref[...] = jnp.concatenate([h0_new, h1_new], axis=-1)


# --------------------------- parameter handling --------------------------------
def init_raw_params(key):
    """PyTorch-style raw parameters, stored pre-transposed as (in, out)."""
    def lin(key, fan_in, fan_out):
        k1, k2 = jax.random.split(key)
        bound = 1.0 / jnp.sqrt(fan_in)
        w = jax.random.uniform(k1, (fan_in, fan_out), jnp.float32, -bound, bound)
        b = jax.random.uniform(k2, (1, fan_out), jnp.float32, -bound, bound)
        return w, b

    keys = jax.random.split(key, 4 + N_LAYERS * _D)
    e1w, e1b = lin(keys[0], OBSER_DIM, OBSER_DIM)
    e2w, e2b = lin(keys[1], OBSER_DIM, LATENT_DIM)
    e3w, e3b = lin(keys[2], LATENT_DIM, LATENT_DIM)
    embedding = (e1w, e1b, e2w, e2b, e3w, e3b)

    # GRU weights per (layer, direction): W_ih (in, 3H) [r|z|n], W_hh (H, 3H),
    # b_ih, b_hh (1, 3H)  -- PyTorch gate packing.
    gru = []
    for l in range(N_LAYERS):
        in_dim = LATENT_DIM if l == 0 else _D * LATENT_DIM
        for d in range(_D):
            kk = jax.random.split(keys[3 + l * _D + d], 4)
            bound = 1.0 / jnp.sqrt(LATENT_DIM)
            wih = jax.random.uniform(kk[0], (in_dim, 3 * _H), jnp.float32, -bound, bound)
            whh = jax.random.uniform(kk[1], (_H, 3 * _H), jnp.float32, -bound, bound)
            bih = jax.random.uniform(kk[2], (1, 3 * _H), jnp.float32, -bound, bound)
            bhh = jax.random.uniform(kk[3], (1, 3 * _H), jnp.float32, -bound, bound)
            gru.append((wih, whh, bih, bhh))

    fw, fb = lin(keys[-1], _D * LATENT_DIM, LATENT_DIM)
    return {"embedding": embedding, "gru": tuple(gru), "fc_out": (fw, fb)}


def _gate_cols(w, g):
    """Slice gate g (0=r, 1=z, 2=n) out of a PyTorch-packed (.., 3H) weight."""
    return w[:, g * _H:(g + 1) * _H]


def _fuse_gru_layer(p_fwd, p_bwd):
    """Build direction-fused weights for one bidirectional GRU layer.

    Output column order (gate-major, direction-minor): [r_f|r_b|z_f|z_b|n_f|n_b].
    W_hh is block-diagonal over directions since h_fwd / h_bwd only feed their
    own direction's gates.  Done once at prep time, never per call.
    """
    wih_f, whh_f, bih_f, bhh_f = p_fwd
    wih_b, whh_b, bih_b, bhh_b = p_bwd

    def interleave(a, b):
        return jnp.concatenate(
            [_gate_cols(a, 0), _gate_cols(b, 0),
             _gate_cols(a, 1), _gate_cols(b, 1),
             _gate_cols(a, 2), _gate_cols(b, 2)], axis=1)

    wih = interleave(wih_f, wih_b)                       # (in_dim, 6H)
    bih = interleave(bih_f, bih_b)                       # (1, 6H)
    bhh = interleave(bhh_f, bhh_b)                       # (1, 6H)

    z = jnp.zeros((_H, _H), jnp.float32)
    row_f = jnp.concatenate([_gate_cols(whh_f, 0), z,
                             _gate_cols(whh_f, 1), z,
                             _gate_cols(whh_f, 2), z], axis=1)
    row_b = jnp.concatenate([z, _gate_cols(whh_b, 0),
                             z, _gate_cols(whh_b, 1),
                             z, _gate_cols(whh_b, 2)], axis=1)
    whh = jnp.concatenate([row_f, row_b], axis=0)        # (2H, 6H)
    return wih, whh, bih, bhh


def prepare_fused_params(raw):
    """Flat tuple of arrays in the order the fused kernel expects."""
    g0 = _fuse_gru_layer(raw["gru"][0], raw["gru"][1])   # layer 0 (fwd, bwd)
    g1 = _fuse_gru_layer(raw["gru"][2], raw["gru"][3])   # layer 1 (fwd, bwd)
    fw, fb = raw["fc_out"]
    return tuple(raw["embedding"]) + g0 + g1 + (fw, fb)


# ------------------------------ forward --------------------------------------
@jax.jit
def f_phi_rnn_forward(fused_params, z_x_k, hidden, cell):
    """z_x_k: (B, obser_dim); hidden: (D*n_layers, B, H); cell: passthrough."""
    B = z_x_k.shape[0]
    n_inputs = 2 + len(fused_params)
    pred, hnew_slab = pl.pallas_call(
        fused_forward_kernel,
        out_shape=(
            jax.ShapeDtypeStruct((B, _H), jnp.float32),
            jax.ShapeDtypeStruct((B, _D * N_LAYERS * _H), jnp.float32),
        ),
        in_specs=[pl.BlockSpec(memory_space=pltpu.MemorySpace.VMEM)] * n_inputs,
        out_specs=(
            pl.BlockSpec(memory_space=pltpu.MemorySpace.VMEM),
            pl.BlockSpec(memory_space=pltpu.MemorySpace.VMEM),
        ),
    )(z_x_k, hidden, *fused_params)

    # restore PyTorch layout (D*n_layers, B, H); order matches [l0_f,l0_b,l1_f,l1_b]
    new_hidden = hnew_slab.reshape(B, _D * N_LAYERS, _H).transpose(1, 0, 2)
    return pred, new_hidden, cell


# --------------------------- pure-JAX reference -------------------------------
def reference_forward(raw, z_x_k, hidden, cell):
    e1w, e1b, e2w, e2b, e3w, e3b = raw["embedding"]
    h = _leaky_relu(z_x_k @ e1w + e1b)
    h = _leaky_relu(h @ e2w + e2b)
    emb = h @ e3w + e3b

    layer_in = emb
    new_hidden = []
    H = _H
    for l in range(N_LAYERS):
        dir_outs = []
        for d in range(_D):
            idx = l * _D + d
            h0 = hidden[idx]
            wih, whh, bih, bhh = raw["gru"][idx]
            gi = layer_in @ wih + bih
            gh = h0 @ whh + bhh
            r = jax.nn.sigmoid(gi[:, :H] + gh[:, :H])
            z = jax.nn.sigmoid(gi[:, H:2 * H] + gh[:, H:2 * H])
            n = jnp.tanh(gi[:, 2 * H:] + r * gh[:, 2 * H:])
            h_new = (1.0 - z) * n + z * h0
            dir_outs.append(h_new)
            new_hidden.append(h_new)
        layer_in = jnp.concatenate(dir_outs, axis=-1) if _D == 2 else dir_outs[0]

    fw, fb = raw["fc_out"]
    return layer_in @ fw + fb, jnp.stack(new_hidden, 0), cell


# ------------------------------- main -----------------------------------------
if __name__ == "__main__":
    key = jax.random.PRNGKey(0)
    kp, kx, kh, kc = jax.random.split(key, 4)

    raw_params = init_raw_params(kp)
    fused_params = prepare_fused_params(raw_params)

    z_x_k = jax.random.normal(kx, (BATCH, OBSER_DIM), jnp.float32)
    hidden = jax.random.normal(kh, (_D * N_LAYERS, BATCH, _H), jnp.float32)
    cell = jax.random.normal(kc, (_D * N_LAYERS, BATCH, _H), jnp.float32)

    pred, new_hidden, cell_out = f_phi_rnn_forward(fused_params, z_x_k, hidden, cell)
    jax.block_until_ready((pred, new_hidden, cell_out))

    # sanity check vs pure-JAX reference (also validates the weight repacking)
    ref_pred, ref_hidden, _ = reference_forward(raw_params, z_x_k, hidden, cell)
    assert pred.shape == (BATCH, _H)
    assert new_hidden.shape == (_D * N_LAYERS, BATCH, _H)
    assert cell_out.shape == cell.shape
    assert jnp.allclose(pred, ref_pred, atol=1e-5, rtol=1e-5)
    assert jnp.allclose(new_hidden, ref_hidden, atol=1e-5, rtol=1e-5)

    print("KERNEL_OK")
</pallas_src>

<mosaic_0001>
module attributes {stable_mosaic.version = 11 : i64} {
  func.func @fused_forward_kernel(%arg0: memref<8x16xf32, #tpu.memory_space<vmem>>, %arg1: memref<4x8x32xf32, #tpu.memory_space<vmem>>, %arg2: memref<16x16xf32, #tpu.memory_space<vmem>>, %arg3: memref<1x16xf32, #tpu.memory_space<vmem>>, %arg4: memref<16x32xf32, #tpu.memory_space<vmem>>, %arg5: memref<1x32xf32, #tpu.memory_space<vmem>>, %arg6: memref<32x32xf32, #tpu.memory_space<vmem>>, %arg7: memref<1x32xf32, #tpu.memory_space<vmem>>, %arg8: memref<32x192xf32, #tpu.memory_space<vmem>>, %arg9: memref<64x192xf32, #tpu.memory_space<vmem>>, %arg10: memref<1x192xf32, #tpu.memory_space<vmem>>, %arg11: memref<1x192xf32, #tpu.memory_space<vmem>>, %arg12: memref<64x192xf32, #tpu.memory_space<vmem>>, %arg13: memref<64x192xf32, #tpu.memory_space<vmem>>, %arg14: memref<1x192xf32, #tpu.memory_space<vmem>>, %arg15: memref<1x192xf32, #tpu.memory_space<vmem>>, %arg16: memref<64x32xf32, #tpu.memory_space<vmem>>, %arg17: memref<1x32xf32, #tpu.memory_space<vmem>>, %arg18: memref<8x32xf32, #tpu.memory_space<vmem>>, %arg19: memref<8x128xf32, #tpu.memory_space<vmem>>) attributes {dimension_semantics = [], scalar_prefetch = 0 : i64, scratch_operands = 0 : i64, tpu.core_type = #tpu.core_type<tc>} {
    %c0 = arith.constant 0 : index
    %c0_0 = arith.constant 0 : index
    %0 = vector.load %arg0[%c0, %c0_0] : memref<8x16xf32, #tpu.memory_space<vmem>>, vector<8x16xf32>
    %c0_1 = arith.constant 0 : index
    %c0_2 = arith.constant 0 : index
    %1 = vector.load %arg2[%c0_1, %c0_2] : memref<16x16xf32, #tpu.memory_space<vmem>>, vector<16x16xf32>
    %cst = arith.constant dense<0.000000e+00> : vector<8x16xf32>
    %2 = tpu.matmul %0, %1, %cst {dimension_numbers = #tpu.dot_dimension_numbers<[1], [0], [0], [1], [0, 0, 1, 1], [], []>} : vector<8x16xf32>, vector<16x16xf32>, vector<8x16xf32> -> vector<8x16xf32>
    %c0_3 = arith.constant 0 : index
    %c0_4 = arith.constant 0 : index
    %3 = vector.load %arg3[%c0_3, %c0_4] : memref<1x16xf32, #tpu.memory_space<vmem>>, vector<1x16xf32>
    %4 = vector.broadcast %3 : vector<1x16xf32> to vector<8x16xf32>
    %5 = arith.addf %2, %4 : vector<8x16xf32>
    %cst_5 = arith.constant 0.000000e+00 : f32
    %6 = vector.broadcast %cst_5 : f32 to vector<8x16xf32>
    %7 = arith.cmpf ogt, %5, %6 : vector<8x16xf32>
    %cst_6 = arith.constant 0.00999999977 : f32
    %8 = vector.broadcast %cst_6 : f32 to vector<8x16xf32>
    %9 = arith.mulf %8, %5 : vector<8x16xf32>
    %10 = arith.select %7, %5, %9 : vector<8x16xi1>, vector<8x16xf32>
    %c0_7 = arith.constant 0 : index
    %c0_8 = arith.constant 0 : index
    %11 = vector.load %arg4[%c0_7, %c0_8] : memref<16x32xf32, #tpu.memory_space<vmem>>, vector<16x32xf32>
    %cst_9 = arith.constant dense<0.000000e+00> : vector<8x32xf32>
    %12 = tpu.matmul %10, %11, %cst_9 {dimension_numbers = #tpu.dot_dimension_numbers<[1], [0], [0], [1], [0, 0, 1, 1], [], []>} : vector<8x16xf32>, vector<16x32xf32>, vector<8x32xf32> -> vector<8x32xf32>
    %c0_10 = arith.constant 0 : index
    %c0_11 = arith.constant 0 : index
    %13 = vector.load %arg5[%c0_10, %c0_11] : memref<1x32xf32, #tpu.memory_space<vmem>>, vector<1x32xf32>
    %14 = vector.broadcast %13 : vector<1x32xf32> to vector<8x32xf32>
    %15 = arith.addf %12, %14 : vector<8x32xf32>
    %cst_12 = arith.constant 0.000000e+00 : f32
    %16 = vector.broadcast %cst_12 : f32 to vector<8x32xf32>
    %17 = arith.cmpf ogt, %15, %16 : vector<8x32xf32>
    %cst_13 = arith.constant 0.00999999977 : f32
    %18 = vector.broadcast %cst_13 : f32 to vector<8x32xf32>
    %19 = arith.mulf %18, %15 : vector<8x32xf32>
    %20 = arith.select %17, %15, %19 : vector<8x32xi1>, vector<8x32xf32>
    %c0_14 = arith.constant 0 : index
    %c0_15 = arith.constant 0 : index
    %21 = vector.load %arg6[%c0_14, %c0_15] : memref<32x32xf32, #tpu.memory_space<vmem>>, vector<32x32xf32>
    %cst_16 = arith.constant dense<0.000000e+00> : vector<8x32xf32>
    %22 = tpu.matmul %20, %21, %cst_16 {dimension_numbers = #tpu.dot_dimension_numbers<[1], [0], [0], [1], [0, 0, 1, 1], [], []>} : vector<8x32xf32>, vector<32x32xf32>, vector<8x32xf32> -> vector<8x32xf32>
    %c0_17 = arith.constant 0 : index
    %c0_18 = arith.constant 0 : index
    %23 = vector.load %arg7[%c0_17, %c0_18] : memref<1x32xf32, #tpu.memory_space<vmem>>, vector<1x32xf32>
    %24 = vector.broadcast %23 : vector<1x32xf32> to vector<8x32xf32>
    %25 = arith.addf %22, %24 : vector<8x32xf32>
    %c0_19 = arith.constant 0 : index
    %c0_20 = arith.constant 0 : index
    %c0_21 = arith.constant 0 : index
    %26 = vector.load %arg1[%c0_19, %c0_20, %c0_21] : memref<4x8x32xf32, #tpu.memory_space<vmem>>, vector<1x8x32xf32>
    %27 = vector.shape_cast %26 : vector<1x8x32xf32> to vector<8x32xf32>
    %c1 = arith.constant 1 : index
    %c0_22 = arith.constant 0 : index
    %c0_23 = arith.constant 0 : index
    %28 = vector.load %arg1[%c1, %c0_22, %c0_23] : memref<4x8x32xf32, #tpu.memory_space<vmem>>, vector<1x8x32xf32>
    %29 = vector.shape_cast %28 : vector<1x8x32xf32> to vector<8x32xf32>
    %30 = tpu.concatenate %27, %29 in 1 : vector<8x32xf32>, vector<8x32xf32> -> vector<8x64xf32>
    %c0_24 = arith.constant 0 : index
    %c0_25 = arith.constant 0 : index
    %31 = vector.load %arg8[%c0_24, %c0_25] : memref<32x192xf32, #tpu.memory_space<vmem>>, vector<32x192xf32>
    %c0_26 = arith.constant 0 : index
    %c0_27 = arith.constant 0 : index
    %32 = vector.load %arg9[%c0_26, %c0_27] : memref<64x192xf32, #tpu.memory_space<vmem>>, vector<64x192xf32>
    %c0_28 = arith.constant 0 : index
    %c0_29 = arith.constant 0 : index
    %33 = vector.load %arg10[%c0_28, %c0_29] : memref<1x192xf32, #tpu.memory_space<vmem>>, vector<1x192xf32>
    %c0_30 = arith.constant 0 : index
    %c0_31 = arith.constant 0 : index
    %34 = vector.load %arg11[%c0_30, %c0_31] : memref<1x192xf32, #tpu.memory_space<vmem>>, vector<1x192xf32>
    %cst_32 = arith.constant dense<0.000000e+00> : vector<8x192xf32>
    %35 = tpu.matmul %25, %31, %cst_32 {dimension_numbers = #tpu.dot_dimension_numbers<[1], [0], [0], [1], [0, 0, 1, 1], [], []>} : vector<8x32xf32>, vector<32x192xf32>, vector<8x192xf32> -> vector<8x192xf32>
    %36 = vector.broadcast %33 : vector<1x192xf32> to vector<8x192xf32>
    %37 = arith.addf %35, %36 : vector<8x192xf32>
    %cst_33 = arith.constant dense<0.000000e+00> : vector<8x192xf32>
    %38 = tpu.matmul %30, %32, %cst_33 {dimension_numbers = #tpu.dot_dimension_numbers<[1], [0], [0], [1], [0, 0, 1, 1], [], []>} : vector<8x64xf32>, vector<64x192xf32>, vector<8x192xf32> -> vector<8x192xf32>
    %39 = vector.broadcast %34 : vector<1x192xf32> to vector<8x192xf32>
    %40 = arith.addf %38, %39 : vector<8x192xf32>
    %41 = vector.extract_strided_slice %37 {offsets = [0, 0], sizes = [8, 128], strides = [1, 1]} : vector<8x192xf32> to vector<8x128xf32>
    %42 = vector.extract_strided_slice %40 {offsets = [0, 0], sizes = [8, 128], strides = [1, 1]} : vector<8x192xf32> to vector<8x128xf32>
    %43 = arith.addf %41, %42 : vector<8x128xf32>
    %44 = arith.negf %43 : vector<8x128xf32>
    %45 = math.exp %44 : vector<8x128xf32>
    %cst_34 = arith.constant 1.000000e+00 : f32
    %46 = vector.broadcast %cst_34 : f32 to vector<8x128xf32>
    %47 = arith.addf %46, %45 : vector<8x128xf32>
    %48 = arith.divf %46, %47 : vector<8x128xf32>
    %49 = vector.extract_strided_slice %48 {offsets = [0, 0], sizes = [8, 64], strides = [1, 1]} : vector<8x128xf32> to vector<8x64xf32>
    %50 = vector.extract_strided_slice %48 {offsets = [0, 64], sizes = [8, 64], strides = [1, 1]} : vector<8x128xf32> to vector<8x64xf32>
    %51 = vector.extract_strided_slice %37 {offsets = [0, 128], sizes = [8, 64], strides = [1, 1]} : vector<8x192xf32> to vector<8x64xf32>
    %52 = vector.extract_strided_slice %40 {offsets = [0, 128], sizes = [8, 64], strides = [1, 1]} : vector<8x192xf32> to vector<8x64xf32>
    %53 = arith.mulf %49, %52 : vector<8x64xf32>
    %54 = arith.addf %51, %53 : vector<8x64xf32>
    %55 = math.tanh %54 : vector<8x64xf32>
    %cst_35 = arith.constant 1.000000e+00 : f32
    %56 = vector.broadcast %cst_35 : f32 to vector<8x64xf32>
    %57 = arith.subf %56, %50 : vector<8x64xf32>
    %58 = arith.mulf %57, %55 : vector<8x64xf32>
    %59 = arith.mulf %50, %30 : vector<8x64xf32>
    %60 = arith.addf %58, %59 : vector<8x64xf32>
    %c2 = arith.constant 2 : index
    %c0_36 = arith.constant 0 : index
    %c0_37 = arith.constant 0 : index
    %61 = vector.load %arg1[%c2, %c0_36, %c0_37] : memref<4x8x32xf32, #tpu.memory_space<vmem>>, vector<1x8x32xf32>
    %62 = vector.shape_cast %61 : vector<1x8x32xf32> to vector<8x32xf32>
    %c3 = arith.constant 3 : index
    %c0_38 = arith.constant 0 : index
    %c0_39 = arith.constant 0 : index
    %63 = vector.load %arg1[%c3, %c0_38, %c0_39] : memref<4x8x32xf32, #tpu.memory_space<vmem>>, vector<1x8x32xf32>
    %64 = vector.shape_cast %63 : vector<1x8x32xf32> to vector<8x32xf32>
    %65 = tpu.concatenate %62, %64 in 1 : vector<8x32xf32>, vector<8x32xf32> -> vector<8x64xf32>
    %c0_40 = arith.constant 0 : index
    %c0_41 = arith.constant 0 : index
    %66 = vector.load %arg12[%c0_40, %c0_41] : memref<64x192xf32, #tpu.memory_space<vmem>>, vector<64x192xf32>
    %c0_42 = arith.constant 0 : index
    %c0_43 = arith.constant 0 : index
    %67 = vector.load %arg13[%c0_42, %c0_43] : memref<64x192xf32, #tpu.memory_space<vmem>>, vector<64x192xf32>
    %c0_44 = arith.constant 0 : index
    %c0_45 = arith.constant 0 : index
    %68 = vector.load %arg14[%c0_44, %c0_45] : memref<1x192xf32, #tpu.memory_space<vmem>>, vector<1x192xf32>
    %c0_46 = arith.constant 0 : index
    %c0_47 = arith.constant 0 : index
    %69 = vector.load %arg15[%c0_46, %c0_47] : memref<1x192xf32, #tpu.memory_space<vmem>>, vector<1x192xf32>
    %cst_48 = arith.constant dense<0.000000e+00> : vector<8x192xf32>
    %70 = tpu.matmul %60, %66, %cst_48 {dimension_numbers = #tpu.dot_dimension_numbers<[1], [0], [0], [1], [0, 0, 1, 1], [], []>} : vector<8x64xf32>, vector<64x192xf32>, vector<8x192xf32> -> vector<8x192xf32>
    %71 = vector.broadcast %68 : vector<1x192xf32> to vector<8x192xf32>
    %72 = arith.addf %70, %71 : vector<8x192xf32>
    %cst_49 = arith.constant dense<0.000000e+00> : vector<8x192xf32>
    %73 = tpu.matmul %65, %67, %cst_49 {dimension_numbers = #tpu.dot_dimension_numbers<[1], [0], [0], [1], [0, 0, 1, 1], [], []>} : vector<8x64xf32>, vector<64x192xf32>, vector<8x192xf32> -> vector<8x192xf32>
    %74 = vector.broadcast %69 : vector<1x192xf32> to vector<8x192xf32>
    %75 = arith.addf %73, %74 : vector<8x192xf32>
    %76 = vector.extract_strided_slice %72 {offsets = [0, 0], sizes = [8, 128], strides = [1, 1]} : vector<8x192xf32> to vector<8x128xf32>
    %77 = vector.extract_strided_slice %75 {offsets = [0, 0], sizes = [8, 128], strides = [1, 1]} : vector<8x192xf32> to vector<8x128xf32>
    %78 = arith.addf %76, %77 : vector<8x128xf32>
    %79 = arith.negf %78 : vector<8x128xf32>
    %80 = math.exp %79 : vector<8x128xf32>
    %cst_50 = arith.constant 1.000000e+00 : f32
    %81 = vector.broadcast %cst_50 : f32 to vector<8x128xf32>
    %82 = arith.addf %81, %80 : vector<8x128xf32>
    %83 = arith.divf %81, %82 : vector<8x128xf32>
    %84 = vector.extract_strided_slice %83 {offsets = [0, 0], sizes = [8, 64], strides = [1, 1]} : vector<8x128xf32> to vector<8x64xf32>
    %85 = vector.extract_strided_slice %83 {offsets = [0, 64], sizes = [8, 64], strides = [1, 1]} : vector<8x128xf32> to vector<8x64xf32>
    %86 = vector.extract_strided_slice %72 {offsets = [0, 128], sizes = [8, 64], strides = [1, 1]} : vector<8x192xf32> to vector<8x64xf32>
    %87 = vector.extract_strided_slice %75 {offsets = [0, 128], sizes = [8, 64], strides = [1, 1]} : vector<8x192xf32> to vector<8x64xf32>
    %88 = arith.mulf %84, %87 : vector<8x64xf32>
    %89 = arith.addf %86, %88 : vector<8x64xf32>
    %90 = math.tanh %89 : vector<8x64xf32>
    %cst_51 = arith.constant 1.000000e+00 : f32
    %91 = vector.broadcast %cst_51 : f32 to vector<8x64xf32>
    %92 = arith.subf %91, %85 : vector<8x64xf32>
    %93 = arith.mulf %92, %90 : vector<8x64xf32>
    %94 = arith.mulf %85, %65 : vector<8x64xf32>
    %95 = arith.addf %93, %94 : vector<8x64xf32>
    %c0_52 = arith.constant 0 : index
    %c0_53 = arith.constant 0 : index
    %96 = vector.load %arg16[%c0_52, %c0_53] : memref<64x32xf32, #tpu.memory_space<vmem>>, vector<64x32xf32>
    %cst_54 = arith.constant dense<0.000000e+00> : vector<8x32xf32>
    %97 = tpu.matmul %95, %96, %cst_54 {dimension_numbers = #tpu.dot_dimension_numbers<[1], [0], [0], [1], [0, 0, 1, 1], [], []>} : vector<8x64xf32>, vector<64x32xf32>, vector<8x32xf32> -> vector<8x32xf32>
    %c0_55 = arith.constant 0 : index
    %c0_56 = arith.constant 0 : index
    %98 = vector.load %arg17[%c0_55, %c0_56] : memref<1x32xf32, #tpu.memory_space<vmem>>, vector<1x32xf32>
    %99 = vector.broadcast %98 : vector<1x32xf32> to vector<8x32xf32>
    %100 = arith.addf %97, %99 : vector<8x32xf32>
    %c0_57 = arith.constant 0 : index
    %c0_58 = arith.constant 0 : index
    %101 = vector.load %arg18[%c0_57, %c0_58] : memref<8x32xf32, #tpu.memory_space<vmem>>, vector<8x32xf32>
    tpu.vector_store %arg18[%c0_57, %c0_58], %100 {strides = array<i32>} : memref<8x32xf32, #tpu.memory_space<vmem>>, vector<8x32xf32>,
    %102 = tpu.concatenate %60, %95 in 1 : vector<8x64xf32>, vector<8x64xf32> -> vector<8x128xf32>
    %c0_59 = arith.constant 0 : index
    %c0_60 = arith.constant 0 : index
    %103 = vector.load %arg19[%c0_59, %c0_60] : memref<8x128xf32, #tpu.memory_space<vmem>>, vector<8x128xf32>
    tpu.vector_store %arg19[%c0_59, %c0_60], %102 {strides = array<i32>} : memref<8x128xf32, #tpu.memory_space<vmem>>, vector<8x128xf32>,
    return
  }
}

</mosaic_0001>

<bundles_post_ra>
// kernel: f_phi_rnn_forward.1
= control target key start
LH: loop header
LB: loop body
LE: loop exit
PB: predicated region body
PF: predicated region fallthrough
CT: control target
= control target key end

     0   :  { %s2195_s0 = inlined_call_operand.hbm [shape: f32[8,16], index: 0, kind: input, shape index: {}]   ;;  %s2196_s1 = inlined_call_operand.hbm [shape: f32[4,8,32], index: 1, kind: input, shape index: {}]   ;;  %s2197_s2 = inlined_call_operand.hbm [shape: f32[16,16], index: 2, kind: input, shape index: {}]   ;;  %s2198_s3 = inlined_call_operand.hbm [shape: f32[1,16], index: 3, kind: input, shape index: {}]   ;;  %s2199_s4 = inlined_call_operand.hbm [shape: f32[16,32], index: 4, kind: input, shape index: {}]   ;;  %s2200_s5 = inlined_call_operand.hbm [shape: f32[1,32], index: 5, kind: input, shape index: {}]   ;;  %s2201_s6 = inlined_call_operand.hbm [shape: f32[32,32], index: 6, kind: input, shape index: {}]   ;;  %s2202_s7 = inlined_call_operand.hbm [shape: f32[1,32], index: 7, kind: input, shape index: {}]   ;;  %s2203_s8 = inlined_call_operand.hbm [shape: f32[32,192], index: 8, kind: input, shape index: {}]   ;;  %s2204_s9 = inlined_call_operand.hbm [shape: f32[64,192], index: 9, kind: input, shape index: {}]   ;;  %s2205_s10 = inlined_call_operand.hbm [shape: f32[1,192], index: 10, kind: input, shape index: {}]   ;;  %s2206_s11 = inlined_call_operand.hbm [shape: f32[1,192], index: 11, kind: input, shape index: {}]   ;;  %s2207_s12 = inlined_call_operand.vmem [shape: f32[64,192], index: 12, kind: input, shape index: {}]   ;;  %s2208_s13 = inlined_call_operand.hbm [shape: f32[64,192], index: 13, kind: input, shape index: {}]   ;;  %s2209_s14 = inlined_call_operand.hbm [shape: f32[1,192], index: 14, kind: input, shape index: {}]   ;;  %s2210_s15 = inlined_call_operand.hbm [shape: f32[1,192], index: 15, kind: input, shape index: {}]   ;;  %s2211_s16 = inlined_call_operand.vmem [shape: f32[64,32], index: 16, kind: input, shape index: {}]   ;;  %s2212_s17 = inlined_call_operand.hbm [shape: f32[1,32], index: 17, kind: input, shape index: {}]   ;;  %s2213_s18 = inlined_call_operand.hbm [shape: f32[8,32], index: 18, kind: output, shape index: {0}]   ;;  %s2214_s19 = inlined_call_operand.vmem [shape: f32[8,128], index: 19, kind: output, shape index: {1}]  }
   0x1   :  { %2221 = sst [smem:[#allocation39_spill]] %s2195_s0 }
   0x2   :  { %2222 = sst [smem:[#allocation40_spill]] %s2196_s1 }
   0x3   :  { %2223 = sst [smem:[#allocation41_spill]] %s2197_s2 }
   0x4   :  { %2224 = sst [smem:[#allocation42_spill]] %s2198_s3 }
   0x5   :  { %2225 = sst [smem:[#allocation43_spill]] %s2211_s16 }
   0x6   :  { %2226 = sst [smem:[#allocation44_spill]] %s2213_s18 }
   0x7   :  { %2227 = sst [smem:[#allocation45_spill]] %s2214_s19 }
   0x8   :  { %25 = vsyncpa [#allocation3], 0 }
   0x9   :  { %26 = vsyncpa [#allocation6], 0 }
   0xa   :  { %27 = vsyncpa [#allocation9], 0 }
   0xb   :  { %28 = vsyncpa [#allocation12], 0 }
   0xc   :  { %29 = vsyncpa [#allocation15], 0 }
   0xd   :  { %30 = vsyncpa [#allocation18], 0 }
   0xe   :  { %31 = vsyncpa [#allocation21], 0 }
   0xf   :  { %32 = vsyncpa [#allocation24], 0 }
  0x10   :  { %33 = vsyncpa [#allocation27], 0 }
  0x11   :  { %34 = vsyncpa [#allocation4], 0  ;;  %s1691_s0 = smov [#allocation5]   ;;  %s2228_s1 = sld [smem:[#allocation40_spill]] }
  0x12   :  { %s50_s30 = sshll.u32 %s1691_s0, 4  ;;  %s51_s30 = int_to_ptr.vmem [resolvable:$true] %s50_s30 }
  0x17   :  { %s1297_s22 = scalar_lea.hbm %s2228_s1, 512 }
  0x18   :  { %p1298_p0 = scmp.ne.s32.totalorder %s2228_s1, %s1297_s22  ;;  %p1301_p1 = scmp.lt.u32.totalorder %s1297_s22, %s2228_s1 }
  0x1a   :  { %p1303_p2 = pnand %p1301_p1, %p1298_p0 }
  0x1c   :  { %1306 = shalt.err (!%p1303_p2)
}
  0x1d   :  { %s1307_s3 = scalar_lea.vmem %s51_s30, 512  ;;  %p1312_p4 = scmp.lt.s32.totalorder %s51_s30, %s51_s30 }
  0x1e   :  { %p1308_p3 = scmp.ne.s32.totalorder %s51_s30, %s1307_s3  ;;  %p1313_p5 = scmp.lt.s32.totalorder %s1307_s3, %s1307_s3 }
  0x20   :  { %p1314_p6 = por %p1313_p5, %p1312_p4 }
  0x22   :  { %p1315_p7 = pnand %p1314_p6, %p1308_p3 }
  0x24   :  { %1318 = shalt.err (!%p1315_p7)
}
  0x25   :  { %s1692_s26 = smov 128   ;;  %s1693_s27 = smov 8  }
  0x26   :  { %56 = dma.hbm_to_vmem [thread:$0]  %s2228_s1, 512, %s51_s30, [#allocation6], %s1692_s26, %s1692_s26, %s1693_s27  }
  0x27   :  { %s1694_s0 = smov [#allocation8]   ;;  %s1695_s21 = smov [#allocation11]  }
  0x28   :  { %s75_s20 = sshll.u32 %s1694_s0, 4  ;;  %s97_s22 = sshll.u32 %s1695_s21, 4  ;;  %s76_s20 = int_to_ptr.vmem [resolvable:$true] %s75_s20  ;;  %s98_s22 = int_to_ptr.vmem [resolvable:$true] %s97_s22 }
  0x29   :  { %s2229_s24 = sld [smem:[#allocation42_spill]] }
  0x2f   :  { %s1319_s25 = scalar_lea.hbm %s2229_s24, 16 }
  0x30   :  { %p1320_p8 = scmp.ne.s32.totalorder %s2229_s24, %s1319_s25  ;;  %p1323_p9 = scmp.lt.u32.totalorder %s1319_s25, %s2229_s24 }
  0x32   :  { %p1325_p10 = pnand %p1323_p9, %p1320_p8 }
  0x34   :  { %1328 = shalt.err (!%p1325_p10)
}
  0x35   :  { %s1329_s30 = scalar_lea.vmem %s76_s20, 16  ;;  %s1333_s1 = scalar_lea.vmem %s76_s20, 32 }
  0x36   :  { %p1330_p11 = scmp.ne.s32.totalorder %s76_s20, %s1329_s30  ;;  %p1334_p12 = scmp.lt.s32.totalorder %s76_s20, %s76_s20 }
  0x37   :  { %p1335_p13 = scmp.lt.s32.totalorder %s1333_s1, %s1329_s30 }
  0x39   :  { %p1336_p0 = por %p1335_p13, %p1334_p12 }
  0x3b   :  { %p1337_p1 = pnand %p1336_p0, %p1330_p11 }
  0x3d   :  { %1340 = shalt.err (!%p1337_p1)
}
  0x3e   :  { %78 = dma.hbm_to_vmem [thread:$0]  %s2229_s24, 16, %s76_s20, [#allocation9]  }
  0x3f   :  { %s1341_s16 = scalar_lea.hbm %s2200_s5, 16 }
  0x40   :  { %p1342_p2 = scmp.ne.s32.totalorder %s2200_s5, %s1341_s16  ;;  %p1345_p3 = scmp.lt.u32.totalorder %s1341_s16, %s2200_s5 }
  0x42   :  { %p1347_p4 = pnand %p1345_p3, %p1342_p2 }
  0x44   :  { %1350 = shalt.err (!%p1347_p4)
}
  0x45   :  { %s1351_s25 = scalar_lea.vmem %s98_s22, 16  ;;  %s1355_s3 = scalar_lea.vmem %s98_s22, 32 }
  0x46   :  { %p1352_p5 = scmp.ne.s32.totalorder %s98_s22, %s1351_s25  ;;  %p1356_p6 = scmp.lt.s32.totalorder %s98_s22, %s98_s22 }
  0x47   :  { %p1357_p7 = scmp.lt.s32.totalorder %s1355_s3, %s1351_s25 }
  0x49   :  { %p1358_p8 = por %p1357_p7, %p1356_p6 }
  0x4b   :  { %p1359_p9 = pnand %p1358_p8, %p1352_p5 }
  0x4d   :  { %1362 = shalt.err (!%p1359_p9)
}
  0x4e   :  { %100 = dma.hbm_to_vmem [thread:$0]  %s2200_s5, 16, %s98_s22, [#allocation12]  }
  0x4f   :  { %s1696_s30 = smov [#allocation14]   ;;  %s1363_s18 = scalar_lea.hbm %s2202_s7, 16 }
  0x50   :  { %s119_s1 = sshll.u32 %s1696_s30, 4  ;;  %p1364_p10 = scmp.ne.s32.totalorder %s2202_s7, %s1363_s18  ;;  %s120_s1 = int_to_ptr.vmem [resolvable:$true] %s119_s1 }
  0x51   :  { %p1367_p11 = scmp.lt.u32.totalorder %s1363_s18, %s2202_s7 }
  0x53   :  { %p1369_p12 = pnand %p1367_p11, %p1364_p10 }
  0x55   :  { %1372 = shalt.err (!%p1369_p12)
}
  0x56   :  { %s1373_s2 = scalar_lea.vmem %s120_s1, 16  ;;  %s1377_s5 = scalar_lea.vmem %s120_s1, 32 }
  0x57   :  { %p1374_p13 = scmp.ne.s32.totalorder %s120_s1, %s1373_s2  ;;  %p1378_p0 = scmp.lt.s32.totalorder %s120_s1, %s120_s1 }
  0x58   :  { %p1379_p1 = scmp.lt.s32.totalorder %s1377_s5, %s1373_s2 }
  0x5a   :  { %p1380_p2 = por %p1379_p1, %p1378_p0 }
  0x5c   :  { %p1381_p3 = pnand %p1380_p2, %p1374_p13 }
  0x5e   :  { %1384 = shalt.err (!%p1381_p3)
}
  0x5f   :  { %122 = dma.hbm_to_vmem [thread:$0]  %s2202_s7, 16, %s120_s1, [#allocation15]  }
  0x60   :  { %s1697_s25 = smov [#allocation17]   ;;  %s1698_s20 = smov [#allocation20]  }
  0x61   :  { %s140_s3 = sshll.u32 %s1697_s25, 4  ;;  %s163_s24 = sshll.u32 %s1698_s20, 4  ;;  %s141_s3 = int_to_ptr.vmem [resolvable:$true] %s140_s3  ;;  %s164_s24 = int_to_ptr.vmem [resolvable:$true] %s163_s24 }
  0x62   :  { %s1385_s29 = scalar_lea.hbm %s2204_s9, 2048 }
  0x63   :  { %p1386_p4 = scmp.ne.s32.totalorder %s2204_s9, %s1385_s29  ;;  %p1389_p5 = scmp.lt.u32.totalorder %s1385_s29, %s2204_s9 }
  0x65   :  { %p1391_p6 = pnand %p1389_p5, %p1386_p4 }
  0x67   :  { %1394 = shalt.err (!%p1391_p6)
}
  0x68   :  { %s1395_s7 = scalar_lea.vmem %s141_s3, 2048  ;;  %p1400_p8 = scmp.lt.s32.totalorder %s141_s3, %s141_s3 }
  0x69   :  { %p1396_p7 = scmp.ne.s32.totalorder %s141_s3, %s1395_s7  ;;  %p1401_p9 = scmp.lt.s32.totalorder %s1395_s7, %s1395_s7 }
  0x6b   :  { %p1402_p10 = por %p1401_p9, %p1400_p8 }
  0x6d   :  { %p1403_p11 = pnand %p1402_p10, %p1396_p7 }
  0x6f   :  { %1406 = shalt.err (!%p1403_p11)
}
  0x70   :  { %s1699_s1 = smov 256   ;;  %s1700_s21 = smov 16  }
  0x71   :  { %146 = dma.hbm_to_vmem [thread:$0]  %s2204_s9, 2048, %s141_s3, [#allocation18], %s1699_s1, %s1699_s1, %s1700_s21  }
  0x72   :  { %s1407_s25 = scalar_lea.hbm %s2206_s11, 32 }
  0x73   :  { %p1408_p12 = scmp.ne.s32.totalorder %s2206_s11, %s1407_s25  ;;  %p1411_p13 = scmp.lt.u32.totalorder %s1407_s25, %s2206_s11 }
  0x75   :  { %p1413_p0 = pnand %p1411_p13, %p1408_p12 }
  0x77   :  { %1416 = shalt.err (!%p1413_p0)
}
  0x78   :  { %s1417_s18 = scalar_lea.vmem %s164_s24, 32  ;;  %p1422_p2 = scmp.lt.s32.totalorder %s164_s24, %s164_s24 }
  0x79   :  { %p1418_p1 = scmp.ne.s32.totalorder %s164_s24, %s1417_s18  ;;  %p1423_p3 = scmp.lt.s32.totalorder %s1417_s18, %s1417_s18 }
  0x7b   :  { %p1424_p4 = por %p1423_p3, %p1422_p2 }
  0x7d   :  { %p1425_p5 = pnand %p1424_p4, %p1418_p1 }
  0x7f   :  { %1428 = shalt.err (!%p1425_p5)
}
  0x80   :  { %166 = dma.hbm_to_vmem [thread:$0]  %s2206_s11, 32, %s164_s24, [#allocation21]  }
  0x81   :  { %s1701_s0 = smov [#allocation23]   ;;  %s1702_s19 = smov [#allocation2]  }
  0x82   :  { %s187_s16 = sshll.u32 %s1701_s0, 4  ;;  %s41_s7 = sshll.u32 %s1702_s19, 4  ;;  %s188_s16 = int_to_ptr.vmem [resolvable:$true] %s187_s16  ;;  %s42_s7 = int_to_ptr.vmem [resolvable:$true] %s41_s7 }
  0x83   :  { %s1429_s22 = scalar_lea.hbm %s2209_s14, 32 }
  0x84   :  { %p1430_p6 = scmp.ne.s32.totalorder %s2209_s14, %s1429_s22  ;;  %p1433_p7 = scmp.lt.u32.totalorder %s1429_s22, %s2209_s14 }
  0x86   :  { %p1435_p8 = pnand %p1433_p7, %p1430_p6 }
  0x88   :  { %1438 = shalt.err (!%p1435_p8)
}
  0x89   :  { %s1439_s11 = scalar_lea.vmem %s188_s16, 32  ;;  %p1444_p10 = scmp.lt.s32.totalorder %s188_s16, %s188_s16 }
  0x8a   :  { %p1440_p9 = scmp.ne.s32.totalorder %s188_s16, %s1439_s11  ;;  %p1445_p11 = scmp.lt.s32.totalorder %s1439_s11, %s1439_s11 }
  0x8c   :  { %p1446_p12 = por %p1445_p11, %p1444_p10 }
  0x8e   :  { %p1447_p13 = pnand %p1446_p12, %p1440_p9 }
  0x90   :  { %1450 = shalt.err (!%p1447_p13)
}
  0x91   :  { %190 = dma.hbm_to_vmem [thread:$0]  %s2209_s14, 32, %s188_s16, [#allocation24]  }
  0x92   :  { %s2230_s9 = sld [smem:[#allocation39_spill]] }
  0x98   :  { %s1451_s3 = scalar_lea.hbm %s2230_s9, 128 }
  0x99   :  { %p1452_p0 = scmp.ne.s32.totalorder %s2230_s9, %s1451_s3  ;;  %p1455_p1 = scmp.lt.u32.totalorder %s1451_s3, %s2230_s9 }
  0x9b   :  { %p1457_p2 = pnand %p1455_p1, %p1452_p0 }
  0x9d   :  { %1460 = shalt.err (!%p1457_p2)
}
  0x9e   :  { %s1461_s22 = scalar_lea.vmem %s42_s7, 128  ;;  %p1466_p4 = scmp.lt.s32.totalorder %s42_s7, %s42_s7 }
  0x9f   :  { %p1462_p3 = scmp.ne.s32.totalorder %s42_s7, %s1461_s22  ;;  %p1467_p5 = scmp.lt.s32.totalorder %s1461_s22, %s1461_s22 }
  0xa1   :  { %p1468_p6 = por %p1467_p5, %p1466_p4 }
  0xa3   :  { %p1469_p7 = pnand %p1468_p6, %p1462_p3 }
  0xa5   :  { %1472 = shalt.err (!%p1469_p7)
}
  0xa6   :  { %44 = dma.hbm_to_vmem [thread:$0]  %s2230_s9, 128, %s42_s7, [#allocation3]  }
  0xa7   :  { %s1703_s23 = smov [#allocation7]   ;;  %s1704_s20 = smov [#allocation10]  }
  0xa8   :  { %s62_s25 = sshll.u32 %s1703_s23, 4  ;;  %s84_s30 = sshll.u32 %s1704_s20, 4  ;;  %s63_s25 = int_to_ptr.vmem [resolvable:$true] %s62_s25  ;;  %s1919_s30 = int_to_ptr.vmem [resolvable:$true] %s84_s30 }
  0xa9   :  { %s2231_s28 = sld [smem:[#allocation41_spill]] }
  0xaf   :  { %s1473_s29 = scalar_lea.hbm %s2231_s28, 256 }
  0xb0   :  { %p1474_p8 = scmp.ne.s32.totalorder %s2231_s28, %s1473_s29  ;;  %p1477_p9 = scmp.lt.u32.totalorder %s1473_s29, %s2231_s28 }
  0xb2   :  { %p1479_p10 = pnand %p1477_p9, %p1474_p8 }
  0xb4   :  { %1482 = shalt.err (!%p1479_p10)
}
  0xb5   :  { %s1483_s7 = scalar_lea.vmem %s63_s25, 256  ;;  %p1488_p12 = scmp.lt.s32.totalorder %s63_s25, %s63_s25 }
  0xb6   :  { %p1484_p11 = scmp.ne.s32.totalorder %s63_s25, %s1483_s7  ;;  %p1489_p13 = scmp.lt.s32.totalorder %s1483_s7, %s1483_s7 }
  0xb8   :  { %p1490_p0 = por %p1489_p13, %p1488_p12 }
  0xba   :  { %p1491_p1 = pnand %p1490_p0, %p1484_p11 }
  0xbc   :  { %1494 = shalt.err (!%p1491_p1)
}
  0xbd   :  { %68 = dma.hbm_to_vmem [thread:$0]  %s2231_s28, 256, %s63_s25, [#allocation6], %s1692_s26, %s1692_s26, %s1693_s27  }
  0xbe   :  { %s1495_s14 = scalar_lea.hbm %s2199_s4, 256 }
  0xbf   :  { %p1496_p2 = scmp.ne.s32.totalorder %s2199_s4, %s1495_s14  ;;  %p1499_p3 = scmp.lt.u32.totalorder %s1495_s14, %s2199_s4 }
  0xc1   :  { %p1501_p4 = pnand %p1499_p3, %p1496_p2 }
  0xc3   :  { %1504 = shalt.err (!%p1501_p4)
}
  0xc4   :  { %s1505_s24 = scalar_lea.vmem %s1919_s30, 256  ;;  %p1510_p6 = scmp.lt.s32.totalorder %s1919_s30, %s1919_s30 }
  0xc5   :  { %p1506_p5 = scmp.ne.s32.totalorder %s1919_s30, %s1505_s24  ;;  %p1511_p7 = scmp.lt.s32.totalorder %s1505_s24, %s1505_s24 }
  0xc7   :  { %p1512_p8 = por %p1511_p7, %p1510_p6 }
  0xc9   :  { %p1513_p9 = pnand %p1512_p8, %p1506_p5 }
  0xcb   :  { %1516 = shalt.err (!%p1513_p9)
}
  0xcc   :  { %90 = dma.hbm_to_vmem [thread:$0]  %s2199_s4, 256, %s1919_s30, [#allocation9], %s1692_s26, %s1692_s26, %s1693_s27  }
  0xcd   :  { %s1705_s29 = smov [#allocation13]   ;;  %s1706_s3 = smov [#allocation16]  }
  0xce   :  { %s106_s18 = sshll.u32 %s1705_s29, 4  ;;  %s128_s0 = sshll.u32 %s1706_s3, 4  ;;  %s107_s18 = int_to_ptr.vmem [resolvable:$true] %s106_s18  ;;  %s1956_s0 = int_to_ptr.vmem [resolvable:$true] %s128_s0 }
  0xcf   :  { %s1517_s9 = scalar_lea.hbm %s2201_s6, 512 }
  0xd0   :  { %p1518_p10 = scmp.ne.s32.totalorder %s2201_s6, %s1517_s9  ;;  %p1521_p11 = scmp.lt.u32.totalorder %s1517_s9, %s2201_s6 }
  0xd2   :  { %p1523_p12 = pnand %p1521_p11, %p1518_p10 }
  0xd4   :  { %1526 = shalt.err (!%p1523_p12)
}
  0xd5   :  { %s1527_s4 = scalar_lea.vmem %s107_s18, 512  ;;  %p1532_p0 = scmp.lt.s32.totalorder %s107_s18, %s107_s18 }
  0xd6   :  { %p1528_p13 = scmp.ne.s32.totalorder %s107_s18, %s1527_s4  ;;  %p1533_p1 = scmp.lt.s32.totalorder %s1527_s4, %s1527_s4 }
  0xd8   :  { %p1534_p2 = por %p1533_p1, %p1532_p0 }
  0xda   :  { %p1535_p3 = pnand %p1534_p2, %p1528_p13 }
  0xdc   :  { %1538 = shalt.err (!%p1535_p3)
}
  0xdd   :  { %112 = dma.hbm_to_vmem [thread:$0]  %s2201_s6, 512, %s107_s18, [#allocation12], %s1692_s26, %s1692_s26, %s1693_s27  }
  0xde   :  { %s1539_s11 = scalar_lea.hbm %s2203_s8, 1024 }
  0xdf   :  { %p1540_p4 = scmp.ne.s32.totalorder %s2203_s8, %s1539_s11  ;;  %p1543_p5 = scmp.lt.u32.totalorder %s1539_s11, %s2203_s8 }
  0xe1   :  { %p1545_p6 = pnand %p1543_p5, %p1540_p4 }
  0xe3   :  { %1548 = shalt.err (!%p1545_p6)
}
  0xe4   :  { %s1549_s3 = scalar_lea.vmem %s1956_s0, 1024  ;;  %p1554_p8 = scmp.lt.s32.totalorder %s1956_s0, %s1956_s0 }
  0xe5   :  { %p1550_p7 = scmp.ne.s32.totalorder %s1956_s0, %s1549_s3  ;;  %p1555_p9 = scmp.lt.s32.totalorder %s1549_s3, %s1549_s3 }
  0xe7   :  { %p1556_p10 = por %p1555_p9, %p1554_p8 }
  0xe9   :  { %p1557_p11 = pnand %p1556_p10, %p1550_p7 }
  0xeb   :  { %1560 = shalt.err (!%p1557_p11)
}
  0xec   :  { %134 = dma.hbm_to_vmem [thread:$0]  %s2203_s8, 1024, %s1956_s0, [#allocation15], %s1699_s1, %s1699_s1, %s1700_s21  }
  0xed   :  { %s1707_s27 = smov [#allocation19]   ;;  %s1708_s19 = smov [#allocation22]  }
  0xee   :  { %s153_s18 = sshll.u32 %s1707_s27, 4  ;;  %s174_s7 = sshll.u32 %s1708_s19, 4  ;;  %s154_s18 = int_to_ptr.vmem [resolvable:$true] %s153_s18  ;;  %s1993_s7 = int_to_ptr.vmem [resolvable:$true] %s174_s7 }
  0xef   :  { %s1561_s5 = scalar_lea.hbm %s2205_s10, 32 }
  0xf0   :  { %p1562_p12 = scmp.ne.s32.totalorder %s2205_s10, %s1561_s5  ;;  %p1565_p13 = scmp.lt.u32.totalorder %s1561_s5, %s2205_s10 }
  0xf2   :  { %p1567_p0 = pnand %p1565_p13, %p1562_p12 }
  0xf4   :  { %1570 = shalt.err (!%p1567_p0)
}
  0xf5   :  { %s1571_s8 = scalar_lea.vmem %s154_s18, 32  ;;  %p1576_p2 = scmp.lt.s32.totalorder %s154_s18, %s154_s18 }
  0xf6   :  { %p1572_p1 = scmp.ne.s32.totalorder %s154_s18, %s1571_s8  ;;  %p1577_p3 = scmp.lt.s32.totalorder %s1571_s8, %s1571_s8 }
  0xf8   :  { %p1578_p4 = por %p1577_p3, %p1576_p2 }
  0xfa   :  { %p1579_p5 = pnand %p1578_p4, %p1572_p1 }
  0xfc   :  { %1582 = shalt.err (!%p1579_p5)
}
  0xfd   :  { %156 = dma.hbm_to_vmem [thread:$0]  %s2205_s10, 32, %s154_s18, [#allocation18]  }
  0xfe   :  { %s1583_s11 = scalar_lea.hbm %s2208_s13, 2048 }
  0xff   :  { %p1584_p6 = scmp.ne.s32.totalorder %s2208_s13, %s1583_s11  ;;  %p1587_p7 = scmp.lt.u32.totalorder %s1583_s11, %s2208_s13 }
 0x101   :  { %p1589_p8 = pnand %p1587_p7, %p1584_p6 }
 0x103   :  { %1592 = shalt.err (!%p1589_p8)
}
 0x104   :  { %s1593_s3 = scalar_lea.vmem %s1993_s7, 2048  ;;  %p1598_p10 = scmp.lt.s32.totalorder %s1993_s7, %s1993_s7 }
 0x105   :  { %p1594_p9 = scmp.ne.s32.totalorder %s1993_s7, %s1593_s3  ;;  %p1599_p11 = scmp.lt.s32.totalorder %s1593_s3, %s1593_s3 }
 0x107   :  { %p1600_p12 = por %p1599_p11, %p1598_p10 }
 0x109   :  { %p1601_p13 = pnand %p1600_p12, %p1594_p9 }
 0x10b   :  { %1604 = shalt.err (!%p1601_p13)
}
 0x10c   :  { %180 = dma.hbm_to_vmem [thread:$0]  %s2208_s13, 2048, %s1993_s7, [#allocation21], %s1699_s1, %s1699_s1, %s1700_s21  }
 0x10d   :  { %s1709_s26 = smov [#allocation25]   ;;  %s1710_s18 = smov [#allocation26]  }
 0x10e   :  { %s197_s27 = sshll.u32 %s1709_s26, 4  ;;  %s209_s19 = sshll.u32 %s1710_s18, 4  ;;  %s198_s27 = int_to_ptr.vmem [resolvable:$true] %s197_s27  ;;  %s210_s19 = int_to_ptr.vmem [resolvable:$true] %s209_s19 }
 0x10f   :  { %s1605_s5 = scalar_lea.hbm %s2210_s15, 32 }
 0x110   :  { %p1606_p0 = scmp.ne.s32.totalorder %s2210_s15, %s1605_s5  ;;  %p1609_p1 = scmp.lt.u32.totalorder %s1605_s5, %s2210_s15 }
 0x112   :  { %p1611_p2 = pnand %p1609_p1, %p1606_p0 }
 0x114   :  { %1614 = shalt.err (!%p1611_p2)
}
 0x115   :  { %s1615_s13 = scalar_lea.vmem %s198_s27, 32  ;;  %p1620_p4 = scmp.lt.s32.totalorder %s198_s27, %s198_s27 }
 0x116   :  { %p1616_p3 = scmp.ne.s32.totalorder %s198_s27, %s1615_s13  ;;  %p1621_p5 = scmp.lt.s32.totalorder %s1615_s13, %s1615_s13 }
 0x118   :  { %p1622_p6 = por %p1621_p5, %p1620_p4 }
 0x11a   :  { %p1623_p7 = pnand %p1622_p6, %p1616_p3 }
 0x11c   :  { %1626 = shalt.err (!%p1623_p7)
}
 0x11d   :  { %200 = dma.hbm_to_vmem [thread:$0]  %s2210_s15, 32, %s198_s27, [#allocation24]  }
 0x11e   :  { %s1627_s0 = scalar_lea.hbm %s2212_s17, 16 }
 0x11f   :  { %p1628_p8 = scmp.ne.s32.totalorder %s2212_s17, %s1627_s0  ;;  %p1631_p9 = scmp.lt.u32.totalorder %s1627_s0, %s2212_s17 }
 0x121   :  { %p1633_p10 = pnand %p1631_p9, %p1628_p8 }
 0x123   :  { %1636 = shalt.err (!%p1633_p10)
}
 0x124   :  { %s1637_s24 = scalar_lea.vmem %s210_s19, 16  ;;  %s1641_s25 = scalar_lea.vmem %s210_s19, 32 }
 0x125   :  { %p1638_p11 = scmp.ne.s32.totalorder %s210_s19, %s1637_s24  ;;  %p1642_p12 = scmp.lt.s32.totalorder %s210_s19, %s210_s19 }
 0x126   :  { %p1643_p13 = scmp.lt.s32.totalorder %s1641_s25, %s1637_s24 }
 0x128   :  { %p1644_p0 = por %p1643_p13, %p1642_p12 }
 0x12a   :  { %p1645_p1 = pnand %p1644_p0, %p1638_p11 }
 0x12c   :  { %1648 = shalt.err (!%p1645_p1)
}
 0x12d   :  { %212 = dma.hbm_to_vmem [thread:$0]  %s2212_s17, 16, %s210_s19, [#allocation27]  }
 0x12e   :  { %1671 = dma.done.wait [#allocation3], 128  }
 0x12f   :  { %1672 = vsyncadd [#allocation3], 4294967168 }
 0x130   :  { %1673 = dma.done.wait [#allocation6], 768  }
 0x131   :  { %1674 = vsyncadd [#allocation6], 4294966528 }
 0x132   :  { %1675 = dma.done.wait [#allocation9], 272  }
 0x133   :  { %1676 = vsyncadd [#allocation9], 4294967024 }
 0x134   :  { %1677 = dma.done.wait [#allocation12], 528  }
 0x135   :  { %1678 = vsyncadd [#allocation12], 4294966768 }
 0x136   :  { %1679 = dma.done.wait [#allocation15], 1040  }
 0x137   :  { %1680 = vsyncadd [#allocation15], 4294966256 }
 0x138   :  { %1681 = dma.done.wait [#allocation18], 2080  }
 0x139   :  { %1682 = vsyncadd [#allocation18], 4294965216 }
 0x13a   :  { %1683 = dma.done.wait [#allocation21], 2080  }
 0x13b   :  { %1684 = vsyncadd [#allocation21], 4294965216 }
 0x13c   :  { %1685 = dma.done.wait [#allocation24], 64  }
 0x13d   :  { %1686 = vsyncadd [#allocation24], 4294967232 }
 0x13e   :  { %1687 = dma.done.wait [#allocation27], 16  }
 0x13f   :  { %1688 = vsyncadd [#allocation27], 4294967280  ;;  %v1711_v0 = vmov 0.0|0.0   ;;  %vm1712_vm0 = vmmov 0   ;;  %v1713_v1 = vmov 0.0   ;;  %v262_v2 = vld [vmem:[#allocation7] sm:$0xff] }
 0x140   :  { %1179 = vmatprep.subr.bf16.mxu0 %v1711_v0  ;;  %1139 = vmatprep.mubr.msk.f32.mxu0 %vm1712_vm0, %v1713_v1  ;;  %v263_v3 = vld [vmem:[#allocation7 + $0x8] sm:$0xff]  ;;  %v261_v5 = vld [vmem:[#allocation2] sm:$0xff]  ;;  %vm271_vm1 = vcmask 130048   ;;  %v1101_v12 = vld [vmem:[#allocation8] ss:$0 sm:$0xff]  ;;  %s1714_s17 = smov 32  }
 0x141   :  { %1182 = vmatprep.subr.bf16.mxu1 %v1711_v0  ;;  %1146 = vmatprep.mubr.msk.f32.mxu1 %vm1712_vm0, %v1713_v1  ;;  %v1180_v4 = vpack.c.bf16 %v263_v3, %v262_v2  ;;  %v348_v6 = vld [vmem:[#allocation10] sm:$0xff]  ;;  %v349_v7 = vld [vmem:[#allocation10 + $0x8] sm:$0xff]  ;;  %v433_v9 = vld [vmem:[#allocation13] sm:$0xff]  ;;  %vm444_vm4 = vcmask 261120   ;;  %vm648_vm5 = vcmask 523264   ;;  %s1715_s29 = smov 64  }
 0x142   :  { %v1183_v8 = vpack.c.bf16 %v349_v7, %v348_v6  ;;  %v434_v10 = vld [vmem:[#allocation13 + $0x8] sm:$0xff]  ;;  %v435_v18 = vld [vmem:[#allocation13 + $0x10] sm:$0xff]  ;;  %v436_v19 = vld [vmem:[#allocation13 + $0x18] sm:$0xff]  ;;  %s2232_s27 = sld [smem:[#allocation43_spill]]  ;;  %s2233_s23 = sld [smem:[#allocation45_spill]] }
 0x143   :  { %1181 = vmatpush3.bf16.msra.mxu0 %v1180_v4  ;;  %v1186_v11 = vpack.c.bf16 %v434_v10, %v433_v9  ;;  %v1189_v20 = vpack.c.bf16 %v436_v19, %v435_v18  ;;  %v520_v21 = vld [vmem:[#allocation5 + $0x8] sm:$0xff]  ;;  %v537_v23 = vld [vmem:[#allocation17 + $0x18] sm:$0xff]  ;;  %v528_v29 = vld [vmem:[#allocation16 + $0x10] sm:$0xff]  ;;  %s1716_s20 = smov [#allocation28]  }
 0x144   :  { %1185 = vmatprep.subr.bf16.mxu0 %v1711_v0  ;;  %1184 = vmatpush3.bf16.msra.mxu1 %v1183_v8  ;;  %v535_v22 = vld [vmem:[#allocation17 + $0x8] sm:$0xff]  ;;  %v529_v26 = vld [vmem:[#allocation16 + $0x18] sm:$0xff]  ;;  %v526_v28 = vld [vmem:[#allocation16] sm:$0xff]  ;;  %s1080_s11 = sshll.u32 %s1716_s20, 4  ;;  %s1081_s11 = int_to_ptr.vmem [resolvable:$true] %s1080_s11 }
 0x145   :  { %522 = vrot.lane.b32.xlu0 %v520_v21, %s1714_s17  ;;  %v1199_v24 = vpack.c.bf16 %v537_v23, %v535_v22  ;;  %v527_v25 = vld [vmem:[#allocation16 + $0x8] sm:$0xff]  ;;  %v1193_v30 = vpack.c.bf16 %v528_v29, %v526_v28  ;;  %v533_v32 = vld [vmem:[#allocation16 + $0x38] sm:$0xff]  ;;  %v534_v36 = vld [vmem:[#allocation17] sm:$0xff]  ;;  %s1649_s24 = scalar_lea.vmem %s1081_s11, 128  ;;  %p1654_p3 = scmp.lt.s32.totalorder %s1081_s11, %s1081_s11 }
 0x146   :  { %1140 = vmatmul.mubr.msk.f32.vlgmr.msra.gmra.mrb[0].mxu0 %vm271_vm1, %v261_v5  ;;  %v1191_v27 = vpack.c.bf16 %v529_v26, %v527_v25  ;;  %v531_v31 = vld [vmem:[#allocation16 + $0x28] sm:$0xff]  ;;  %v1103_v34 = vld [vmem:[#allocation11] ss:$0 sm:$0xff]  ;;  %v536_v37 = vld [vmem:[#allocation17 + $0x10] sm:$0xff]  ;;  %p1650_p2 = scmp.ne.s32.totalorder %s1081_s11, %s1649_s24  ;;  %p1655_p4 = scmp.lt.s32.totalorder %s1649_s24, %s1649_s24 }
 0x147   :  { %1157 = vmatprep.mubr.msk.f32.mxu0 %vm1712_vm0, %v1713_v1  ;;  %1187 = vmatpush3.bf16.msra.mxu0 %v1186_v11  ;;  %v1195_v33 = vpack.c.bf16 %v533_v32, %v531_v31  ;;  %v539_v40 = vld [vmem:[#allocation17 + $0x28] sm:$0xff]  ;;  %v541_v41 = vld [vmem:[#allocation17 + $0x38] sm:$0xff]  ;;  %v1201_v43 = vpack.c.bf16 %v536_v37, %v534_v36  ;;  %v538_v45 = vld [vmem:[#allocation17 + $0x20] sm:$0xff]  ;;  %v553_v11 = vlaneseq }
 0x148   :  { %1188 = vmatprep.subr.bf16.mxu0 %v1711_v0  ;;  %1192 = vmatprep.subr.bf16.mxu1 %v1191_v27  ;;  %v1203_v44 = vpack.c.bf16 %v541_v41, %v539_v40  ;;  %v540_v46 = vld [vmem:[#allocation17 + $0x30] sm:$0xff]  ;;  %v543_v48 = vld [vmem:[#allocation17 + $0x48] sm:$0xff]  ;;  %v545_v49 = vld [vmem:[#allocation17 + $0x58] sm:$0xff]  ;;  %p1656_p5 = por %p1655_p4, %p1654_p3 }
 0x149   :  { %v1205_v50 = vpack.c.bf16 %v540_v46, %v538_v45  ;;  %v1207_v51 = vpack.c.bf16 %v545_v49, %v543_v48  ;;  %v542_v52 = vld [vmem:[#allocation17 + $0x40] sm:$0xff]  ;;  %v544_v53 = vld [vmem:[#allocation17 + $0x50] sm:$0xff]  ;;  %v547_v54 = vld [vmem:[#allocation17 + $0x68] sm:$0xff] }
 0x14a   :  { %v549_v55 = vld [vmem:[#allocation17 + $0x78] sm:$0xff]  ;;  %v1209_v56 = vpack.c.bf16 %v544_v53, %v542_v52  ;;  %v546_v58 = vld [vmem:[#allocation17 + $0x60] sm:$0xff]  ;;  %v548_v59 = vld [vmem:[#allocation17 + $0x70] sm:$0xff]  ;;  %p1657_p6 = pnand %p1656_p5, %p1650_p2 }
 0x14b   :  { %1190 = vmatpush3.bf16.msra.mxu0 %v1189_v20  ;;  %v1211_v57 = vpack.c.bf16 %v549_v55, %v547_v54  ;;  %v1213_v60 = vpack.c.bf16 %v548_v59, %v546_v58  ;;  %v518_v62 = vld [vmem:[#allocation5] sm:$0xff]  ;;  %v532_v2 = vld [vmem:[#allocation16 + $0x30] sm:$0xff]  ;;  %v769_v40 = vld [vmem:[#allocation22] sm:$0xff] }
 0x14c   :  { %1200 = vmatprep.subr.bf16.mxu0 %v1199_v24  ;;  %v530_v63 = vld [vmem:[#allocation16 + $0x20] sm:$0xff]  ;;  %v1105_v5 = vld [vmem:[#allocation14] ss:$0 sm:$0xff]  ;;  %v771_v41 = vld [vmem:[#allocation22 + $0x10] sm:$0xff] }
 0x14d   :  { %v1197_v3 = vpack.c.bf16 %v532_v2, %v530_v63  ;;  %v772_v36 = vld [vmem:[#allocation22 + $0x18] sm:$0xff]  ;;  %v774_v46 = vld [vmem:[#allocation22 + $0x28] sm:$0xff]  ;;  %v773_v53 = vld [vmem:[#allocation22 + $0x20] sm:$0xff] }
 0x14e   :  { %v754_v37 = vld [vmem:[%s2207_s12 + $0x8] sm:$0xff]  ;;  %v755_v45 = vld [vmem:[%s2207_s12 + $0x10] sm:$0xff]  ;;  %v757_v55 = vld [vmem:[%s2207_s12 + $0x20] sm:$0xff] }
 0x14f   :  { %v776_v48 = vld [vmem:[#allocation22 + $0x38] sm:$0xff]  ;;  %v775_v54 = vld [vmem:[#allocation22 + $0x30] sm:$0xff]  ;;  %v778_v58 = vld [vmem:[#allocation22 + $0x48] sm:$0xff] }
 0x150   :  { %v758_v49 = vld [vmem:[%s2207_s12 + $0x28] sm:$0xff]  ;;  %v764_v63 = vld [vmem:[%s2207_s12 + $0x58] sm:$0xff] }
 0x151   :  { %v780_v59 = vld [vmem:[#allocation22 + $0x58] sm:$0xff]  ;;  %v777_v2 = vld [vmem:[#allocation22 + $0x40] sm:$0xff] }
 0x1b7   :  { %v523_v61 = vpop.permute.xlu0 %522 }
 0x1b8   :  { %v525_v4 = vsel %vm444_vm4, %v518_v62, %v523_v61  ;;  %v1239_v61 = vpack.c.bf16 %v780_v59, %v778_v58  ;;  %v762_v62 = vld [vmem:[%s2207_s12 + $0x48] sm:$0xff]  ;;  %v984_v58 = vld [vmem:[%s2232_s27 + $0x20] sm:$0xff] }
 0x1b9   :  { %739 = vrot.lane.b32.xlu1 %v525_v4, %s1715_s29  ;;  %v985_v59 = vld [vmem:[%s2232_s27 + $0x28] sm:$0xff] }
 0x219   :  { %v341_v13 = vpop.f32.mrb[0].mxu0 }
 0x21a   :  { %v342_v14 = vadd.f32 %v1101_v12, %v341_v13  ;;  %v1141_v15 = vpop.f32.mrb[1].mxu0  ;;  %v554_v12 = vshrl.u32 %v553_v11, 7  ;;  %v766_v11 = vld [vmem:[%s2207_s12 + $0x68] sm:$0xff] }
 0x21b   :  { %v550_v15 = vld [vmem:[#allocation19] sm:$0x3] }
 0x21c   :  { %vm345_vm2 = vcmp.gt.f32.partialorder %v342_v14, 0.0  ;;  %v346_v16 = vmul.f32 0.01, %v342_v14  ;;  %v2073_v13 = vsub.s32 0, %v554_v12  ;;  %v2077_v26 = vsub.s32 1, %v554_v12 }
 0x21e   :  { %v347_v17 = vsel %vm345_vm2, %v342_v14, %v346_v16  ;;  %v551_v14 = vld [vmem:[#allocation20] sm:$0x3]  ;;  %v560_v28 = vrot.slane %v550_v15, %v2077_v26 }
 0x21f   :  { %1147 = vmatmul.mubr.msk.f32.vlgmr.msra.gmra.mrb[0].mxu1 %vm271_vm1, %v347_v17  ;;  %v641_v16 = vrot.slane %v551_v14, %v2073_v13  ;;  %v556_v17 = vrot.slane %v550_v15, %v2073_v13  ;;  %v645_v27 = vrot.slane %v551_v14, %v2077_v26  ;;  %v768_v15 = vld [vmem:[%s2207_s12 + $0x78] sm:$0xff] }
 0x220   :  { %630 = vmatprep.mubr.f32.mxu1 %v1713_v1  ;;  %1194 = vmatpush1.bf16.msra.mxu1 %v1193_v30 }
 0x221   :  { %1196 = vmatprep.subr.bf16.mxu1 %v1195_v33 }
 0x224   :  { %1198 = vmatpush1.bf16.msra.mxu1 %v1197_v3  ;;  %v1223_v3 = vpack.c.bf16 %v764_v63, %v762_v62  ;;  %v986_v62 = vld [vmem:[%s2232_s27 + $0x30] sm:$0xff]  ;;  %v987_v63 = vld [vmem:[%s2232_s27 + $0x38] sm:$0xff] }
 0x2f2   :  { %v426_v35 = vpop.f32.mrb[0].mxu1 }
 0x2f3   :  { %v427_v38 = vadd.f32 %v1103_v34, %v426_v35  ;;  %v1148_v39 = vpop.f32.mrb[1].mxu1  ;;  %v747_v34 = vld [vmem:[#allocation5 + $0x18] sm:$0xff] }
 0x2f4   :  { %749 = vrot.lane.b32.xlu1 %v747_v34, %s1714_s17  ;;  %v770_v35 = vld [vmem:[#allocation22 + $0x8] sm:$0xff] }
 0x2f5   :  { %vm430_vm3 = vcmp.gt.f32.partialorder %v427_v38, 0.0  ;;  %v431_v42 = vmul.f32 0.01, %v427_v38  ;;  %v756_v39 = vld [vmem:[%s2207_s12 + $0x18] sm:$0xff] }
 0x2f7   :  { %v432_v47 = vsel %vm430_vm3, %v427_v38, %v431_v42  ;;  %v1231_v38 = vpack.c.bf16 %v772_v36, %v770_v35  ;;  %v1215_v42 = vpack.c.bf16 %v756_v39, %v754_v37  ;;  %v786_v37 = vld [vmem:[#allocation25] sm:$0x3] }
 0x2f8   :  { %1158 = vmatmul.mubr.msk.f32.vlgmr.msra.gmra.mrb[2].mxu0 %vm444_vm4, %v432_v47  ;;  %v878_v39 = vrot.slane %v786_v37, %v2073_v13 }
 0x2f9   :  { %1202 = vmatpush1.bf16.msra.mxu0 %v1201_v43  ;;  %716 = vmatprep.mubr.f32.mxu0 %v1713_v1  ;;  %v1233_v43 = vpack.c.bf16 %v771_v41, %v769_v40 }
 0x2fa   :  { %1204 = vmatprep.subr.bf16.mxu0 %v1203_v44  ;;  %v753_v44 = vld [vmem:[%s2207_s12] sm:$0xff]  ;;  %1216 = vmatprep.subr.bf16.mxu1 %v1215_v42 }
 0x2fb   :  { %v1217_v47 = vpack.c.bf16 %v755_v45, %v753_v44 }
 0x2fd   :  { %1206 = vmatpush1.bf16.msra.mxu0 %v1205_v50  ;;  %v760_v50 = vld [vmem:[%s2207_s12 + $0x38] sm:$0xff] }
 0x2fe   :  { %1208 = vmatprep.subr.bf16.mxu0 %v1207_v51  ;;  %v1235_v51 = vpack.c.bf16 %v776_v48, %v774_v46  ;;  %v1219_v52 = vpack.c.bf16 %v760_v50, %v758_v49 }
 0x301   :  { %1210 = vmatpush1.bf16.msra.mxu0 %v1209_v56  ;;  %v1237_v56 = vpack.c.bf16 %v775_v54, %v773_v53  ;;  %v981_v54 = vld [vmem:[%s2232_s27 + $0x8] sm:$0xff] }
 0x302   :  { %1212 = vmatprep.subr.bf16.mxu0 %v1211_v57  ;;  %v759_v57 = vld [vmem:[%s2207_s12 + $0x30] sm:$0xff] }
 0x305   :  { %1214 = vmatpush1.bf16.msra.mxu0 %v1213_v60  ;;  %v1221_v60 = vpack.c.bf16 %v759_v57, %v757_v55  ;;  %v982_v55 = vld [vmem:[%s2232_s27 + $0x10] sm:$0xff] }
 0x306   :  { %1232 = vmatprep.subr.bf16.mxu0 %v1231_v38  ;;  %v785_v38 = vld [vmem:[#allocation23] sm:$0x3] }
 0x307   :  { %v795_v48 = vrot.slane %v785_v38, %v2077_v26 }
 0x308   :  { %1108 = vmatmul.mubr.msk.f32.vlgmr.msra.gmra.mrb[4].mxu0 %vm648_vm5, %v525_v4  ;;  %v779_v4 = vld [vmem:[#allocation22 + $0x50] sm:$0xff] }
 0x309   :  { %952 = vmatprep.mubr.f32.mxu0 %v1713_v1  ;;  %1234 = vmatpush1.bf16.msra.mxu0 %v1233_v43 }
 0x30a   :  { %1236 = vmatprep.subr.bf16.mxu0 %v1235_v51 }
 0x30d   :  { %1238 = vmatpush1.bf16.msra.mxu0 %v1237_v56 }
 0x30e   :  { %1240 = vmatprep.subr.bf16.mxu0 %v1239_v61  ;;  %v1254_v61 = vpack.c.bf16 %v985_v59, %v984_v58 }
 0x3cb   :  { %v514_v6 = vpop.f32.mrb[2].mxu0 }
 0x3cc   :  { %v515_v7 = vadd.f32 %v1105_v5, %v514_v6  ;;  %v1159_v8 = vpop.f32.mrb[3].mxu0  ;;  %v761_v5 = vld [vmem:[%s2207_s12 + $0x40] sm:$0xff]  ;;  %v763_v6 = vld [vmem:[%s2207_s12 + $0x50] sm:$0xff] }
 0x3cd   :  { %v1241_v8 = vpack.c.bf16 %v779_v4, %v777_v2  ;;  %v1225_v12 = vpack.c.bf16 %v763_v6, %v761_v5  ;;  %v1257_v2 = vpack.c.bf16 %v987_v63, %v986_v62 }
 0x3ce   :  { %1107 = vmatmul.mubr.msk.f32.vlgmr.msra.gmra.mrb[2].mxu1 %vm444_vm4, %v515_v7 }
 0x3cf   :  { %867 = vmatprep.mubr.f32.mxu1 %v1713_v1  ;;  %1218 = vmatpush1.bf16.msra.mxu1 %v1217_v47 }
 0x3d0   :  { %1220 = vmatprep.subr.bf16.mxu1 %v1219_v52  ;;  %1242 = vmatpush1.bf16.msra.mxu0 %v1241_v8 }
 0x3d3   :  { %1222 = vmatpush1.bf16.msra.mxu1 %v1221_v60 }
 0x3d4   :  { %1224 = vmatprep.subr.bf16.mxu1 %v1223_v3 }
 0x3d7   :  { %1226 = vmatpush1.bf16.msra.mxu1 %v1225_v12 }
 0x3db   :  { %v718_v9 = vpop.f32.mrb[4].mxu0 }
 0x3dc   :  { %v720_v10 = vpop.f32.mrb[5].mxu0  ;;  %v719_v18 = vadd.f32 %v718_v9, %v641_v16  ;;  %v782_v9 = vld [vmem:[#allocation22 + $0x68] sm:$0xff]  ;;  %v781_v16 = vld [vmem:[#allocation22 + $0x60] sm:$0xff] }
 0x3dd   :  { %v721_v29 = vadd.f32 %v720_v10, %v645_v27  ;;  %v784_v10 = vld [vmem:[#allocation22 + $0x78] sm:$0xff] }
 0x3de   :  { %v1243_v14 = vpack.c.bf16 %v784_v10, %v782_v9 }
 0x3e0   :  { %1244 = vmatprep.subr.bf16.mxu0 %v1243_v14 }
 0x4a1   :  { %v632_v19 = vpop.f32.mrb[2].mxu1 }
 0x4a2   :  { %v633_v20 = vadd.f32 %v632_v19, %v556_v17  ;;  %v634_v21 = vpop.f32.mrb[3].mxu1  ;;  %v783_v17 = vld [vmem:[#allocation22 + $0x70] sm:$0xff] }
 0x4a3   :  { %v635_v32 = vadd.f32 %v634_v21, %v560_v28  ;;  %v765_v19 = vld [vmem:[%s2207_s12 + $0x60] sm:$0xff]  ;;  %v1245_v21 = vpack.c.bf16 %v783_v17, %v781_v16 }
 0x4a4   :  { %v723_v22 = vadd.f32 %v719_v18, %v633_v20  ;;  %v1227_v18 = vpack.c.bf16 %v768_v15, %v766_v11  ;;  %v767_v20 = vld [vmem:[%s2207_s12 + $0x70] sm:$0xff] }
 0x4a5   :  { %1246 = vmatpush1.bf16.msra.mxu0 %v1245_v21  ;;  %v1113_v11 = vld [vmem:[#allocation26] ss:$0 sm:$0xff] }
 0x4a6   :  { %v1109_v23 = vmul.f32 -1.442695, %v723_v22  ;;  %v1229_v22 = vpack.c.bf16 %v767_v20, %v765_v19  ;;  %1228 = vmatprep.subr.bf16.mxu1 %v1227_v18 }
 0x4a8   :  { %1285 = vpow2.f32 %v1109_v23  ;;  %1230 = vmatpush1.bf16.msra.mxu1 %v1229_v22  ;;  %v740_v23 = vpop.permute.xlu1 %739 }
 0x4a9   :  { %1247 = vmatprep.subr.bf16.mxu1 %v1711_v0 }
 0x4b2   :  { %v1286_v24 = vpop.eup %1285 }
 0x4b3   :  { %v727_v25 = vadd.f32 1.0, %v1286_v24  ;;  %v745_v24 = vld [vmem:[#allocation5 + $0x10] sm:$0xff] }
 0x4b5   :  { %1287 = vrcp.f32 %v727_v25  ;;  %v750_v25 = vpop.permute.xlu1 %749 }
 0x4b6   :  { %v752_v27 = vsel %vm444_vm4, %v745_v24, %v750_v25 }
 0x4b7   :  { %1111 = vmatmul.mubr.msk.f32.vlgmr.msra.gmra.mrb[6].mxu0 %vm648_vm5, %v752_v27 }
 0x4bf   :  { %v2081_v30 = vpop.eup %1287 }
 0x4c0   :  { %v730_v31 = vmul.f32 %v2081_v30, %v721_v29  ;;  %v733_v28 = vsub.f32 1.0, %v2081_v30 }
 0x4c2   :  { %v731_v33 = vadd.f32 %v730_v31, %v635_v32  ;;  %v742_v31 = vmul.f32 %v2081_v30, %v740_v23  ;;  %v791_v30 = vrot.slane %v785_v38, %v2073_v13  ;;  %v980_v13 = vld [vmem:[%s2232_s27] sm:$0xff] }
 0x4c3   :  { %v1248_v56 = vpack.c.bf16 %v981_v54, %v980_v13 }
 0x4c4   :  { %1289 = vtanh.f32 %v731_v33 }
 0x4ce   :  { %v1290_v7 = vpop.eup %1289 }
 0x4cf   :  { %735 = vrot.lane.b32.xlu0 %v1290_v7, %s1715_s29 }
 0x541   :  { %v736_v29 = vpop.permute.xlu0 %735 }
 0x542   :  { %v738_v32 = vmul.f32 %v736_v29, %v733_v28 }
 0x544   :  { %v743_v33 = vadd.f32 %v742_v31, %v738_v32 }
 0x546   :  { %799 = vrot.lane.b32.xlu0 %v743_v33, %s1715_s29 }
 0x54a   :  { %975 = vrot.lane.b32.xlu0 %v752_v27, %s1715_s29 }
 0x58a   :  { %v954_v35 = vpop.f32.mrb[6].mxu0 }
 0x58b   :  { %v956_v36 = vpop.f32.mrb[7].mxu0  ;;  %v955_v40 = vadd.f32 %v954_v35, %v878_v39 }
 0x5b8   :  { %v800_v34 = vpop.permute.xlu0 %799 }
 0x5b9   :  { %1110 = vmatmul.mubr.msk.f32.vlgmr.msra.gmra.mrb[4].mxu1 %vm648_vm5, %v800_v34 }
 0x5ba   :  { %1176 = vmatprep.mubr.msk.f32.mxu1 %vm1712_vm0, %v1713_v1  ;;  %v882_v1 = vrot.slane %v786_v37, %v2077_v26  ;;  %v983_v26 = vld [vmem:[%s2232_s27 + $0x18] sm:$0xff]  ;;  %1249 = vmatpush3.bf16.msra.mxu1 %v1248_v56 }
 0x5bb   :  { %v1251_v57 = vpack.c.bf16 %v983_v26, %v982_v55  ;;  %1250 = vmatprep.subr.bf16.mxu1 %v1711_v0 }
 0x5bc   :  { %v957_v49 = vadd.f32 %v956_v36, %v882_v1  ;;  %v976_v4 = vpop.permute.xlu0 %975 }
 0x5be   :  { %1252 = vmatpush3.bf16.msra.mxu1 %v1251_v57 }
 0x5bf   :  { %1253 = vmatprep.subr.bf16.mxu1 %v1711_v0 }
 0x5c2   :  { %1255 = vmatpush3.bf16.msra.mxu1 %v1254_v61 }
 0x5c3   :  { %1256 = vmatprep.subr.bf16.mxu1 %v1711_v0 }
 0x5c6   :  { %1258 = vmatpush3.bf16.msra.mxu1 %v1257_v2 }
 0x68c   :  { %v869_v41 = vpop.f32.mrb[4].mxu1 }
 0x68d   :  { %v870_v42 = vadd.f32 %v869_v41, %v791_v30  ;;  %v871_v43 = vpop.f32.mrb[5].mxu1 }
 0x68e   :  { %v872_v52 = vadd.f32 %v871_v43, %v795_v48 }
 0x68f   :  { %v959_v44 = vadd.f32 %v955_v40, %v870_v42 }
 0x691   :  { %v1112_v45 = vmul.f32 -1.442695, %v959_v44 }
 0x693   :  { %1291 = vpow2.f32 %v1112_v45 }
 0x69d   :  { %v1292_v46 = vpop.eup %1291 }
 0x69e   :  { %v963_v47 = vadd.f32 1.0, %v1292_v46 }
 0x6a0   :  { %1293 = vrcp.f32 %v963_v47 }
 0x6aa   :  { %v1294_v50 = vpop.eup %1293 }
 0x6ab   :  { %v966_v51 = vmul.f32 %v1294_v50, %v957_v49  ;;  %v969_v3 = vsub.f32 1.0, %v1294_v50  ;;  %v978_v7 = vmul.f32 %v1294_v50, %v976_v4 }
 0x6ad   :  { %v967_v53 = vadd.f32 %v966_v51, %v872_v52 }
 0x6af   :  { %1295 = vtanh.f32 %v967_v53 }
 0x6b9   :  { %v1296_v60 = vpop.eup %1295 }
 0x6ba   :  { %971 = vrot.lane.b32.xlu1 %v1296_v60, %s1715_s29 }
 0x72c   :  { %v972_v5 = vpop.permute.xlu1 %971 }
 0x72d   :  { %v974_v6 = vmul.f32 %v972_v5, %v969_v3 }
 0x72f   :  { %v979_v8 = vadd.f32 %v978_v7, %v974_v6 }
 0x731   :  { %v1072_v9 = vsel %vm648_vm5, %v800_v34, %v979_v8  ;;  %996 = vrot.lane.b32.xlu1 %v979_v8, %s1715_s29 }
 0x732   :  { %1073 = vst [vmem:[%s2233_s23] sm:$0xff] %v1072_v9 }
 0x7a3   :  { %v997_v10 = vpop.permute.xlu1 %996 }
 0x7a4   :  { %1177 = vmatmul.mubr.msk.f32.vlgmr.msra.gmra.mrb[6].mxu1 %vm648_vm5, %v997_v10 }
 0x877   :  { %v1066_v0 = vpop.f32.mrb[6].mxu1 }
 0x878   :  { %v1067_v12 = vadd.f32 %v1113_v11, %v1066_v0  ;;  %v1178_v14 = vpop.f32.mrb[7].mxu1 }
 0x87a   :  { %1070 = vst.msk [vmem:[#allocation28] sm:$0xff] %vm444_vm4, %v1067_v12 }
 0x87b   :  { %1660 = shalt.err (!%p1657_p6)
}
 0x87c   :  { %s2234_s15 = sld [smem:[#allocation44_spill]] }
 0x882   :  { %s1661_s28 = scalar_lea.hbm %s2234_s15, 128 }
 0x883   :  { %p1662_p7 = scmp.ne.s32.totalorder %s2234_s15, %s1661_s28  ;;  %p1665_p8 = scmp.lt.u32.totalorder %s1661_s28, %s2234_s15 }
 0x885   :  { %p1667_p9 = pnand %p1665_p8, %p1662_p7 }
 0x887   :  { %1670 = shalt.err (!%p1667_p9)
}
 0x888   :  { %1083 = dma.vmem_to_hbm [thread:$0]  %s1081_s11, 128, %s2234_s15, [#allocation4]  }
 0x889   :  { %1689 = dma.done.wait [#allocation4], 128  }
 0x88a   :  { %1690 = vsyncadd [#allocation4], 4294967168 }
 0x88b   :  { %1091 = vsyncpa [#allocation3], 1 }
 0x88c   :  { %1092 = vsyncpa [#allocation6], 1 }
 0x88d   :  { %1093 = vsyncpa [#allocation9], 1 }
 0x88e   :  { %1094 = vsyncpa [#allocation12], 1 }
 0x88f   :  { %1095 = vsyncpa [#allocation15], 1 }
 0x890   :  { %1096 = vsyncpa [#allocation18], 1 }
 0x891   :  { %1097 = vsyncpa [#allocation21], 1 }
 0x892   :  { %1098 = vsyncpa [#allocation24], 1 }
 0x893   :  { %1099 = vsyncpa [#allocation27], 1 }
 0x894   :  { %1100 = vsyncpa [#allocation4], 1 }

</bundles_post_ra>
